<compile_context>
chip_gen: v7x
topology: tpu7x:2x2x1
jax: 0.10.0
libtpu: 0.0.40
codegen_flags: <defaults>
</compile_context>

<pallas_src>
import functools

import jax
import jax.numpy as jnp
from jax.experimental import pallas as pl
from jax.experimental.pallas import tpu as pltpu

LANE = 128


def _round_up(x, m):
    return ((x + m - 1) // m) * m


def _pad_axis(a, axis, target):
    pad = target - a.shape[axis]
    if pad == 0:
        return a
    widths = [(0, 0)] * a.ndim
    widths[axis] = (0, pad)
    return jnp.pad(a, widths)


# --------------------------------------------------------------------------
# Kernel 1: per-node feature transform   XW = X @ W   (small matmul, bf16 out)
# --------------------------------------------------------------------------
def _xw_kernel(x_ref, w_ref, o_ref):
    o_ref[...] = jnp.dot(
        x_ref[...], w_ref[...], preferred_element_type=jnp.float32
    ).astype(o_ref.dtype)


def xw_matmul(x, w, *, tm=128):
    """XW = X @ W, tiled over node rows; output bf16 (feeds the MXU aggregation)."""
    n, f = x.shape
    o = w.shape[1]
    cost = pl.CostEstimate(
        flops=2 * n * f * o,
        transcendentals=0,
        bytes_accessed=n * f * x.dtype.itemsize + f * o * w.dtype.itemsize + n * o * 2,
    )
    return pl.pallas_call(
        _xw_kernel,
        out_shape=jax.ShapeDtypeStruct((n, o), jnp.bfloat16),
        grid_spec=pltpu.PrefetchScalarGridSpec(
            num_scalar_prefetch=0,
            grid=(n // tm,),
            in_specs=[
                pl.BlockSpec((tm, f), lambda i: (i, 0)),   # X row tile
                pl.BlockSpec((f, o), lambda i: (0, 0)),    # full W (resident)
            ],
            out_specs=pl.BlockSpec((tm, o), lambda i: (i, 0)),
        ),
        compiler_params=pltpu.CompilerParams(
            dimension_semantics=("parallel",),
        ),
        cost_estimate=cost,
    )(x, w)


# --------------------------------------------------------------------------
# Kernel 2: aggregation   Y = A_hat @ XW + b   (optional relu), K-tiled
# --------------------------------------------------------------------------
def _aggregate_kernel(a_ref, xw_ref, b_ref, o_ref, acc_ref, *, apply_relu):
    # a_ref:  (tm, tk) bf16 tile of the normalized adjacency
    # xw_ref: (tk, O)  bf16 tile of the pre-transformed features
    # b_ref:  (1, O)   f32 bias, acc_ref: (tm, O) f32 accumulator
    @pl.when(pl.program_id(1) == 0)
    def _():
        acc_ref[...] = jnp.zeros_like(acc_ref)

    acc_ref[...] += jnp.dot(
        a_ref[...], xw_ref[...], preferred_element_type=jnp.float32
    )

    @pl.when(pl.program_id(1) == pl.num_programs(1) - 1)
    def _():
        h = acc_ref[...] + b_ref[...]
        if apply_relu:
            h = jnp.maximum(h, 0.0)
        o_ref[...] = h.astype(o_ref.dtype)


def aggregate(a_hat, xw, b, *, apply_relu, tm=128, tk=128):
    """A_hat @ XW + b (optional relu); A_hat streamed in (tm, tk) bf16 tiles."""
    n = a_hat.shape[0]
    o = xw.shape[1]
    b2d = b.reshape(1, o)
    kernel = functools.partial(_aggregate_kernel, apply_relu=apply_relu)
    cost = pl.CostEstimate(
        flops=2 * n * n * o,
        transcendentals=0,
        bytes_accessed=(
            n * n * a_hat.dtype.itemsize + n * o * xw.dtype.itemsize + n * o * 4 + o * 4
        ),
    )
    return pl.pallas_call(
        kernel,
        out_shape=jax.ShapeDtypeStruct((n, o), jnp.float32),
        grid_spec=pltpu.PrefetchScalarGridSpec(
            num_scalar_prefetch=0,
            grid=(n // tm, n // tk),                        # reduction axis last
            in_specs=[
                pl.BlockSpec((tm, tk), lambda i, k: (i, k)),  # streamed A_hat tile
                pl.BlockSpec((tk, o), lambda i, k: (k, 0)),   # XW k-slab
                pl.BlockSpec((1, o), lambda i, k: (0, 0)),    # bias (resident)
            ],
            out_specs=pl.BlockSpec((tm, o), lambda i, k: (i, 0)),
            scratch_shapes=[pltpu.VMEM((tm, o), jnp.float32)],
        ),
        compiler_params=pltpu.CompilerParams(
            dimension_semantics=("parallel", "arbitrary"),
        ),
        cost_estimate=cost,
    )(a_hat, xw, b2d)


# --------------------------------------------------------------------------
# Full 2-layer GCN forward
# --------------------------------------------------------------------------
def gcn_forward(a_hat, x, params, *, tile=128, lane=LANE):
    w1, b1, w2, b2 = params
    n = a_hat.shape[0]
    o1, o2 = w1.shape[1], w2.shape[1]

    n_p = _round_up(n, tile)           # pad node dim (zero rows/cols are inert)
    o1_p = _round_up(o1, lane)         # pad out-feature dims for lane-dense stores
    o2_p = _round_up(o2, lane)

    a_p = _pad_axis(_pad_axis(a_hat, 0, n_p), 1, n_p).astype(jnp.bfloat16)
    x_p = _pad_axis(x, 0, n_p)

    w1_p = _pad_axis(w1, 1, o1_p)
    b1_p = _pad_axis(b1, 0, o1_p)
    w2_p = _pad_axis(_pad_axis(w2, 0, o1_p), 1, o2_p)
    b2_p = _pad_axis(b2, 0, o2_p)

    # TODO(synk): for very large graphs, fuse both layers into one pallas_call
    # (layer grid axis + VMEM-resident H) so A_hat is read from HBM only once.

    # layer 1: H = relu(A_hat @ (X @ W1) + b1)
    xw1 = xw_matmul(x_p, w1_p, tm=tile)
    h = aggregate(a_p, xw1, b1_p, apply_relu=True, tm=tile, tk=tile)
    # layer 2: Y = A_hat @ (H @ W2) + b2
    xw2 = xw_matmul(h, w2_p, tm=tile)
    y = aggregate(a_p, xw2, b2_p, apply_relu=False, tm=tile, tk=tile)

    return y[:n, :o2]


def _xavier_uniform(key, fan_in, fan_out):
    limit = (6.0 / (fan_in + fan_out)) ** 0.5
    return jax.random.uniform(
        key, (fan_in, fan_out), jnp.float32, minval=-limit, maxval=limit
    )


if __name__ == "__main__":
    # Small synthetic graph / feature sizes.
    N = 128          # number of nodes
    IN_FEATS = 64
    H_FEATS = 32
    NUM_CLASSES = 16

    key = jax.random.PRNGKey(0)
    k_adj, k_x, k_w1, k_w2 = jax.random.split(key, 4)

    # Synthetic undirected graph with self-loops (dense adjacency).
    adj = (jax.random.uniform(k_adj, (N, N)) < 0.1).astype(jnp.float32)
    adj = jnp.maximum(adj, adj.T)                            # symmetrize
    adj = jnp.maximum(adj, jnp.eye(N, dtype=jnp.float32))    # add self-loops

    # Symmetric normalization D^{-1/2} A D^{-1/2} (glue, plain JAX).
    deg = adj.sum(axis=1)
    norm = jnp.where(deg > 0, jax.lax.rsqrt(deg), 0.0)
    a_hat = norm[:, None] * adj * norm[None, :]

    # Node features + deterministic parameter init (DGL GraphConv: xavier W, zero b).
    x = jax.random.normal(k_x, (N, IN_FEATS), jnp.float32)
    w1 = _xavier_uniform(k_w1, IN_FEATS, H_FEATS)
    b1 = jnp.zeros((H_FEATS,), jnp.float32)
    w2 = _xavier_uniform(k_w2, H_FEATS, NUM_CLASSES)
    b2 = jnp.zeros((NUM_CLASSES,), jnp.float32)

    out = gcn_forward(a_hat, x, (w1, b1, w2, b2))
    jax.block_until_ready(out)

    # Reference check in plain f32 JAX. The kernel uses bf16 A_hat / XW with f32
    # accumulation, so the tolerance is loosened accordingly.
    ref_h = jnp.maximum(a_hat @ x @ w1 + b1, 0.0)
    ref_y = a_hat @ ref_h @ w2 + b2
    assert out.shape == (N, NUM_CLASSES)
    assert jnp.allclose(out, ref_y, atol=5e-2, rtol=5e-2)

    print("KERNEL_OK")
</pallas_src>

<mosaic_0001>
module attributes {stable_mosaic.version = 11 : i64} {
  func.func @_xw_kernel(%arg0: i32, %arg1: memref<128x64xf32, #tpu.memory_space<vmem>>, %arg2: memref<64x128xf32, #tpu.memory_space<vmem>>, %arg3: memref<128x128xbf16, #tpu.memory_space<vmem>>) attributes {dimension_semantics = [#tpu.dimension_semantics<parallel>], iteration_bounds = array<i64: 1>, scalar_prefetch = 0 : i64, scratch_operands = 0 : i64, tpu.core_type = #tpu.core_type<tc>, window_params = [{transform_indices = @transform_0, window_bounds = array<i64: 128, 64>}, {pipeline_mode = #tpu.pipeline_mode<synchronous>, transform_indices = @transform_1, window_bounds = array<i64: 64, 128>}, {transform_indices = @transform_2, window_bounds = array<i64: 128, 128>}]} {
    %c0 = arith.constant 0 : index
    %c0_0 = arith.constant 0 : index
    %0 = vector.load %arg1[%c0, %c0_0] : memref<128x64xf32, #tpu.memory_space<vmem>>, vector<128x64xf32>
    %c0_1 = arith.constant 0 : index
    %c0_2 = arith.constant 0 : index
    %1 = vector.load %arg2[%c0_1, %c0_2] : memref<64x128xf32, #tpu.memory_space<vmem>>, vector<64x128xf32>
    %cst = arith.constant dense<0.000000e+00> : vector<128x128xf32>
    %2 = tpu.matmul %0, %1, %cst {dimension_numbers = #tpu.dot_dimension_numbers<[1], [0], [0], [1], [0, 0, 1, 1], [], []>} : vector<128x64xf32>, vector<64x128xf32>, vector<128x128xf32> -> vector<128x128xf32>
    %3 = arith.truncf %2 : vector<128x128xf32> to vector<128x128xbf16>
    %c0_3 = arith.constant 0 : index
    %c0_4 = arith.constant 0 : index
    %4 = vector.load %arg3[%c0_3, %c0_4] : memref<128x128xbf16, #tpu.memory_space<vmem>>, vector<128x128xbf16>
    tpu.vector_store %arg3[%c0_3, %c0_4], %3 {strides = array<i32>} : memref<128x128xbf16, #tpu.memory_space<vmem>>, vector<128x128xbf16>,
    return
  }
  func.func @transform_0(%arg0: i32) -> (i32, i32) {
    %c0_i32 = arith.constant 0 : i32
    %c0_i32_0 = arith.constant 0 : i32
    return %arg0, %c0_i32 : i32, i32
  }
  func.func @transform_1(%arg0: i32) -> (i32, i32) {
    %c0_i32 = arith.constant 0 : i32
    %c0_i32_0 = arith.constant 0 : i32
    %c0_i32_1 = arith.constant 0 : i32
    return %c0_i32, %c0_i32_0 : i32, i32
  }
  func.func @transform_2(%arg0: i32) -> (i32, i32) {
    %c0_i32 = arith.constant 0 : i32
    %c0_i32_0 = arith.constant 0 : i32
    return %arg0, %c0_i32 : i32, i32
  }
}

</mosaic_0001>

<bundles_post_ra>
// kernel: tpu_custom_call.1
= control target key start
LH: loop header
LB: loop body
LE: loop exit
PB: predicated region body
PF: predicated region fallthrough
CT: control target
= control target key end

     0   :  { %vm36_vm0 = vcmask 523264   ;;  %s654_s0 = inlined_call_operand.vmem [shape: f32[128,64], index: 0, kind: input, shape index: {}]   ;;  %s655_s1 = inlined_call_operand.vmem [shape: f32[64,128], index: 1, kind: input, shape index: {}]   ;;  %s656_s2 = inlined_call_operand.hbm [shape: bf16[128,128], index: 2, kind: output, shape index: {}]  }
   0x1   :  { %v28_v0 = vld [vmem:[%s655_s1] sm:$0xff]  ;;  %v29_v1 = vld [vmem:[%s655_s1 + $0x8] sm:$0xff]  ;;  %v30_v2 = vld [vmem:[%s655_s1 + $0x10] sm:$0xff] }
   0x2   :  { %v485_v3 = vpack.c.bf16 %v29_v1, %v28_v0  ;;  %v31_v4 = vld [vmem:[%s655_s1 + $0x18] sm:$0xff]  ;;  %v32_v6 = vld [vmem:[%s655_s1 + $0x20] sm:$0xff]  ;;  %v33_v7 = vld [vmem:[%s655_s1 + $0x28] sm:$0xff] }
   0x3   :  { %v489_v5 = vpack.c.bf16 %v31_v4, %v30_v2  ;;  %v12_v8 = vld [vmem:[%s654_s0] sm:$0xff]  ;;  %v493_v10 = vpack.c.bf16 %v33_v7, %v32_v6  ;;  %v34_v11 = vld [vmem:[%s655_s1 + $0x30] sm:$0xff]  ;;  %v35_v12 = vld [vmem:[%s655_s1 + $0x38] sm:$0xff] }
   0x4   :  { %486 = vmatprep.subr.bf16.mxu0 %v485_v3  ;;  %501 = vmatprep.subr.bf16.mxu1 %v485_v3  ;;  %v20_v9 = vld [vmem:[%s654_s0 + $0x40] sm:$0xff] }
   0x5   :  { %488 = vmatpush3.bf16.msra.mxu0 %v485_v3  ;;  %505 = vmatpush3.bf16.msra.mxu1 %v485_v3 }
   0x6   :  { %490 = vmatprep.subr.bf16.mxu0 %v489_v5  ;;  %502 = vmatprep.subr.bf16.mxu1 %v489_v5 }
   0x7   :  { %461 = vmatprep.mubr.msk.f32.mxu0 %vm36_vm0, %v12_v8  ;;  %473 = vmatprep.mubr.msk.f32.mxu1 %vm36_vm0, %v20_v9 }
   0x9   :  { %492 = vmatpush3.bf16.msra.mxu0 %v489_v5  ;;  %506 = vmatpush3.bf16.msra.mxu1 %v489_v5 }
   0xa   :  { %7 = vsyncpa [#allocation3], 0  ;;  %494 = vmatprep.subr.bf16.mxu0 %v493_v10  ;;  %503 = vmatprep.subr.bf16.mxu1 %v493_v10  ;;  %v497_v13 = vpack.c.bf16 %v35_v12, %v34_v11  ;;  %v13_v14 = vld [vmem:[%s654_s0 + $0x8] sm:$0xff]  ;;  %v14_v16 = vld [vmem:[%s654_s0 + $0x10] sm:$0xff] }
   0xb   :  { %v21_v15 = vld [vmem:[%s654_s0 + $0x48] sm:$0xff]  ;;  %v22_v17 = vld [vmem:[%s654_s0 + $0x50] sm:$0xff]  ;;  %v15_v18 = vld [vmem:[%s654_s0 + $0x18] sm:$0xff] }
   0xc   :  { %v23_v19 = vld [vmem:[%s654_s0 + $0x58] sm:$0xff]  ;;  %v16_v20 = vld [vmem:[%s654_s0 + $0x20] sm:$0xff]  ;;  %v17_v22 = vld [vmem:[%s654_s0 + $0x28] sm:$0xff] }
   0xd   :  { %496 = vmatpush3.bf16.msra.mxu0 %v493_v10  ;;  %507 = vmatpush3.bf16.msra.mxu1 %v493_v10  ;;  %v24_v21 = vld [vmem:[%s654_s0 + $0x60] sm:$0xff]  ;;  %v25_v23 = vld [vmem:[%s654_s0 + $0x68] sm:$0xff]  ;;  %v18_v24 = vld [vmem:[%s654_s0 + $0x30] sm:$0xff] }
   0xe   :  { %498 = vmatprep.subr.bf16.mxu0 %v497_v13  ;;  %504 = vmatprep.subr.bf16.mxu1 %v497_v13  ;;  %v26_v25 = vld [vmem:[%s654_s0 + $0x70] sm:$0xff]  ;;  %v19_v26 = vld [vmem:[%s654_s0 + $0x38] sm:$0xff] }
   0xf   :  { %v27_v27 = vld [vmem:[%s654_s0 + $0x78] sm:$0xff]  ;;  %s536_s0 = smov [#allocation2]  }
  0x10   :  { %s315_s28 = sshll.u32 %s536_s0, 4  ;;  %s316_s28 = int_to_ptr.vmem [resolvable:$true] %s315_s28 }
  0x11   :  { %500 = vmatpush3.bf16.msra.mxu0 %v497_v13  ;;  %508 = vmatpush3.bf16.msra.mxu1 %v497_v13  ;;  %s512_s29 = scalar_lea.vmem %s316_s28, 1024  ;;  %p517_p1 = scmp.lt.s32.totalorder %s316_s28, %s316_s28 }
  0x12   :  { %p513_p0 = scmp.ne.s32.totalorder %s316_s28, %s512_s29  ;;  %p518_p2 = scmp.lt.s32.totalorder %s512_s29, %s512_s29 }
  0x14   :  { %462 = vmatmul.mubr.msk.f32.vlgmr.msra.gmra.mrb[0].mxu0 %vm36_vm0, %v13_v14  ;;  %474 = vmatmul.mubr.msk.f32.vlgmr.msra.gmra.mrb[0].mxu1 %vm36_vm0, %v21_v15  ;;  %p519_p3 = por %p518_p2, %p517_p1 }
  0x15   :  { %464 = vmatprep.mubr.msk.f32.mxu0 %vm36_vm0, %v14_v16  ;;  %476 = vmatprep.mubr.msk.f32.mxu1 %vm36_vm0, %v22_v17 }
  0x16   :  { %p520_p4 = pnand %p519_p3, %p513_p0 }
  0x18   :  { %465 = vmatmul.mubr.msk.f32.gmra.mrb[2].mxu0 %vm36_vm0, %v15_v18  ;;  %477 = vmatmul.mubr.msk.f32.gmra.mrb[2].mxu1 %vm36_vm0, %v23_v19 }
  0x19   :  { %467 = vmatprep.mubr.msk.f32.mxu0 %vm36_vm0, %v16_v20  ;;  %479 = vmatprep.mubr.msk.f32.mxu1 %vm36_vm0, %v24_v21 }
  0x1c   :  { %468 = vmatmul.mubr.msk.f32.gmra.mrb[4].mxu0 %vm36_vm0, %v17_v22  ;;  %480 = vmatmul.mubr.msk.f32.gmra.mrb[4].mxu1 %vm36_vm0, %v25_v23 }
  0x1d   :  { %470 = vmatprep.mubr.msk.f32.mxu0 %vm36_vm0, %v18_v24  ;;  %482 = vmatprep.mubr.msk.f32.mxu1 %vm36_vm0, %v26_v25 }
  0x20   :  { %471 = vmatmul.mubr.msk.f32.gmra.mrb[6].mxu0 %vm36_vm0, %v19_v26  ;;  %483 = vmatmul.mubr.msk.f32.gmra.mrb[6].mxu1 %vm36_vm0, %v27_v27 }
  0xe7   :  { %v463_v28 = vpop.f32.mrb[0].mxu0  ;;  %v475_v29 = vpop.f32.mrb[0].mxu1 }
  0xe8   :  { %v151_v30 = vpop.f32.mrb[1].mxu0  ;;  %v191_v31 = vpop.f32.mrb[1].mxu1 }
  0xe9   :  { %v377_v32 = vpack.c.bf16 %v463_v28, %v151_v30  ;;  %v397_v33 = vpack.c.bf16 %v475_v29, %v191_v31 }
  0xeb   :  { %378 = vst [vmem:[#allocation2] sm:$0xff] %v377_v32   ;;  %417 = vst [vmem:[#allocation2 + $0x20] sm:$0xff] %v397_v33   ;;  %v466_v34 = vpop.f32.mrb[2].mxu0  ;;  %v478_v35 = vpop.f32.mrb[2].mxu1 }
  0xec   :  { %v161_v36 = vpop.f32.mrb[3].mxu0  ;;  %v201_v37 = vpop.f32.mrb[3].mxu1 }
  0xed   :  { %v382_v38 = vpack.c.bf16 %v466_v34, %v161_v36  ;;  %v402_v39 = vpack.c.bf16 %v478_v35, %v201_v37 }
  0xef   :  { %414 = vst [vmem:[#allocation2 + $0x8] sm:$0xff] %v382_v38   ;;  %418 = vst [vmem:[#allocation2 + $0x28] sm:$0xff] %v402_v39   ;;  %v469_v40 = vpop.f32.mrb[4].mxu0  ;;  %v481_v41 = vpop.f32.mrb[4].mxu1 }
  0xf0   :  { %v171_v42 = vpop.f32.mrb[5].mxu0  ;;  %v211_v43 = vpop.f32.mrb[5].mxu1 }
  0xf1   :  { %v387_v44 = vpack.c.bf16 %v469_v40, %v171_v42  ;;  %v407_v45 = vpack.c.bf16 %v481_v41, %v211_v43 }
  0xf3   :  { %415 = vst [vmem:[#allocation2 + $0x10] sm:$0xff] %v387_v44   ;;  %419 = vst [vmem:[#allocation2 + $0x30] sm:$0xff] %v407_v45   ;;  %v472_v46 = vpop.f32.mrb[6].mxu0  ;;  %v484_v47 = vpop.f32.mrb[6].mxu1 }
  0xf4   :  { %v181_v48 = vpop.f32.mrb[7].mxu0  ;;  %v221_v49 = vpop.f32.mrb[7].mxu1 }
  0xf5   :  { %v392_v50 = vpack.c.bf16 %v472_v46, %v181_v48  ;;  %v412_v51 = vpack.c.bf16 %v484_v47, %v221_v49 }
  0xf7   :  { %416 = vst [vmem:[#allocation2 + $0x18] sm:$0xff] %v392_v50   ;;  %420 = vst [vmem:[#allocation2 + $0x38] sm:$0xff] %v412_v51  }
  0xf8   :  { %523 = shalt.err (!%p520_p4)
}
  0xf9   :  { %s524_s3 = scalar_lea.hbm %s656_s2, 1024 }
  0xfa   :  { %p525_p5 = scmp.ne.s32.totalorder %s656_s2, %s524_s3  ;;  %p528_p6 = scmp.lt.u32.totalorder %s524_s3, %s656_s2 }
  0xfc   :  { %p530_p7 = pnand %p528_p6, %p525_p5 }
  0xfe   :  { %533 = shalt.err (!%p530_p7)
}
  0xff   :  { %s537_s8 = smov 64   ;;  %s538_s9 = smov 4  }
 0x100   :  { %321 = dma.vmem_to_hbm [thread:$0]  %s316_s28, 1024, %s656_s2, [#allocation3], %s537_s8, %s537_s8, %s538_s9  }
 0x101   :  { %534 = dma.done.wait [#allocation3], 1024  }
 0x102   :  { %535 = vsyncadd [#allocation3], 4294966272 }
 0x103   :  { %325 = vsyncpa [#allocation3], 1 }

</bundles_post_ra>
